<compile_context>
chip_gen: v6e
topology: v6e:2x2x1
jax: 0.10.0
libtpu: 0.0.40
codegen_flags: <defaults>
</compile_context>

<pallas_src>
import jax
import jax.numpy as jnp
import numpy as np
from jax import lax
from jax.experimental import pallas as pl
from jax.experimental.pallas import tpu as pltpu

_MIB = 1024 * 1024


def _pick_batch(num_vols, d, target_rows=256, min_steps=2):
    """Largest divisor B of num_vols with B*d <= target_rows, preferring >= min_steps grid steps."""
    divs = [b for b in range(1, num_vols + 1) if num_vols % b == 0]
    cand = [b for b in divs if b * d <= target_rows and num_vols // b >= min_steps]
    if not cand:
        cand = [b for b in divs if b * d <= target_rows]
    if not cand:
        cand = [1]
    return max(cand)


def _vmem_limit(est_bytes):
    # Above default scoped limits, below v7x physical VMEM (64 MiB).
    return int(min(64 * _MIB, max(32 * _MIB, 2 * est_bytes)))


def _make_bands(D, H, W, pad, batch, count_dtype):
    """Host-precomputed band matrices + in-bounds window-cell counts."""
    hw = np.arange(H * W)
    h_idx, w_idx = hw // W, hw % W
    band_hw = ((np.abs(h_idx[:, None] - h_idx[None, :]) <= pad) &
               (np.abs(w_idx[:, None] - w_idx[None, :]) <= pad)).astype(np.float32)  # (HW,HW)
    d = np.arange(D)
    band_d = (np.abs(d[:, None] - d[None, :]) <= pad).astype(np.float32)             # (D,D)
    band_d_bd = np.kron(np.eye(batch, dtype=np.float32), band_d)                     # (B*D,B*D)
    cnt = band_d.sum(1)[:, None] * band_hw.sum(1)[None, :]                           # (D,HW)
    cnt = np.tile(cnt, (batch, 1))                                                    # (B*D,HW)
    return (jnp.asarray(band_hw, jnp.bfloat16),
            jnp.asarray(band_d_bd, count_dtype),
            jnp.asarray(cnt, jnp.float32))


def dropblock3d_pallas(x, u, *, keep_prob, block_size, training=True):
    """Faithful forward of DropBlock3D (training path).

    x: (N, C, D, H, W) float32
    u: (N, C, D, H, W) float32 uniforms in [0,1) (stand-in for torch.rand)
    Returns the 6-D broadcasted output the PyTorch module produces:
      out[a,b,c,d,h,w] = x[b,c,d,h,w] * block_mask[a,b,d,h,w] * numel / sum
    """
    if (not training) or keep_prob == 1.0:
        return x

    assert block_size % 2 == 1, "even block_size changes pooled shape (unsupported)"
    N, C, D, H, W = x.shape
    assert (D - block_size + 1) > 0 and (H - block_size + 1) > 0 and (W - block_size + 1) > 0, \
        "block_size must be smaller than every spatial dim (gamma denominator)"
    pad = block_size // 2
    HW = H * W
    DHW = D * HW
    numel = N * C * D * H * W
    gamma = (keep_prob / block_size ** 3) * (D * H * W) / (
        (D - block_size + 1) * (H - block_size + 1) * (W - block_size + 1))

    # bf16 window counts are exact as long as they fit in bf16's 8-bit mantissa.
    count_dtype = jnp.bfloat16 if block_size ** 2 <= 256 else jnp.float32

    # ---- Stage A batching: B volumes per grid step, B*D MXU rows per step ----
    num_vols = N * C
    B = _pick_batch(num_vols, D, target_rows=256, min_steps=2)
    G = num_vols // B
    rows = B * D

    band_hw, band_d_bd, cnt = _make_bands(D, H, W, pad, B, count_dtype)
    u_rows = u.reshape(G, rows, HW)

    # -------- Stage A: block mask for B volumes per step + partial sums --------
    def block_mask_kernel(u_ref, bhw_ref, bd_ref, cnt_ref, bm_ref, psum_ref):
        seeds = (u_ref[0] < gamma).astype(jnp.bfloat16)            # Bernoulli(gamma), (rows,HW)
        # windowed seed count via two banded matmuls (bf16 operands, f32 accumulate)
        s1 = jnp.dot(seeds, bhw_ref[...],
                     preferred_element_type=jnp.float32)           # (rows, HW)
        # TODO(synk): if MXU-push bound, this tiny dot can become 2*pad sublane
        # pltpu.roll + adds with edge masking (runs on idle XLU/VPU slots).
        s = jnp.dot(bd_ref[...], s1.astype(count_dtype),
                    preferred_element_type=jnp.float32)            # (rows, HW)
        # minpool(mask)==1 iff every in-bounds window cell is a seed iff s == cnt
        block_mask = jnp.where(s > cnt_ref[...] - 0.5,
                               jnp.float32(0.0), jnp.float32(1.0))
        bm_ref[0] = block_mask.astype(jnp.bfloat16)
        psum_ref[0] = jnp.sum(block_mask, keepdims=True)           # (1, 1)

    est_a = (2 * rows * HW * 4                       # u blocks (double buffered)
             + HW * HW * 2                           # band_hw (bf16, resident)
             + rows * rows * jnp.dtype(count_dtype).itemsize
             + rows * HW * 4                         # cnt
             + 2 * rows * HW * 2                     # bm output blocks
             + 4 * rows * HW)                        # f32 temporaries
    bm_rows, psum = pl.pallas_call(
        block_mask_kernel,
        out_shape=(jax.ShapeDtypeStruct((G, rows, HW), jnp.bfloat16),
                   jax.ShapeDtypeStruct((G, 1, 1), jnp.float32)),
        grid_spec=pltpu.PrefetchScalarGridSpec(
            num_scalar_prefetch=0,
            grid=(G,),
            in_specs=[pl.BlockSpec((1, rows, HW), lambda g: (g, 0, 0)),
                      # constants: constant index maps -> DMA'd once, revisited
                      pl.BlockSpec((HW, HW), lambda g: (0, 0)),
                      pl.BlockSpec((rows, rows), lambda g: (0, 0)),
                      pl.BlockSpec((rows, HW), lambda g: (0, 0))],
            out_specs=[pl.BlockSpec((1, rows, HW), lambda g: (g, 0, 0)),
                       pl.BlockSpec((1, 1, 1), lambda g: (g, 0, 0))]),
        compiler_params=pltpu.CompilerParams(
            dimension_semantics=("parallel",),
            vmem_limit_bytes=_vmem_limit(est_a)),
    )(u_rows, band_hw, band_d_bd, cnt)

    # global normalizer from per-step partial sums (tiny XLA op); fed to Stage B via SMEM
    scale = (jnp.float32(numel) / jnp.sum(psum)).reshape(1)

    # -------- Stage B: out = x * block_mask[:, :, None] * numel / sum --------
    # Reproduces PyTorch's right-aligned broadcast of 5-D x with the 6-D
    # expanded block_mask: result shape (max(1,N), max(N,C), C, D, H, W).
    assert N == C or N == 1 or C == 1, "PyTorch broadcast would fail otherwise"
    A0, A1, A2 = max(1, N), max(N, C), C

    bm3 = bm_rows.reshape(N, C, DHW)   # contiguous reshape (free)
    x3 = x.reshape(N, C, DHW)

    def apply_kernel(scale_ref, x_ref, bm_ref, o_ref):
        sc = scale_ref[0]                                   # SMEM scalar (scalar slot)
        bm = bm_ref[0].astype(jnp.float32) * sc             # (C, DHW)
        # out[a,b,c,:] = x[b%N,c,:] * block_mask[a,b%C,:] * scale  (via broadcast)
        o_ref[0] = x_ref[...] * bm[:, None, :]              # (A1, A2, DHW)

    est_b = (N * C * DHW * 4                     # x resident
             + 2 * C * DHW * 2                   # bm blocks
             + 2 * A1 * A2 * DHW * 4             # output blocks
             + 4 * A1 * A2 * DHW)                # temporaries
    out4 = pl.pallas_call(
        apply_kernel,
        out_shape=jax.ShapeDtypeStruct((A0, A1, A2, DHW), jnp.float32),
        grid_spec=pltpu.PrefetchScalarGridSpec(
            num_scalar_prefetch=0,
            grid=(A0,),
            in_specs=[pl.BlockSpec(memory_space=pltpu.MemorySpace.SMEM),   # scale scalar
                      pl.BlockSpec((N, C, DHW), lambda a: (0, 0, 0)),      # x: DMA'd once
                      pl.BlockSpec((1, C, DHW), lambda a: (a, 0, 0))],
            out_specs=pl.BlockSpec((1, A1, A2, DHW), lambda a: (a, 0, 0, 0))),
        compiler_params=pltpu.CompilerParams(
            dimension_semantics=("parallel",),
            vmem_limit_bytes=_vmem_limit(est_b)),
    )(scale, x3, bm3)

    return out4.reshape(A0, A1, A2, D, H, W)


def dropblock3d_reference(x, u, *, keep_prob, block_size):
    """Pure-JAX reference mirroring the PyTorch forward (training path)."""
    N, C, D, H, W = x.shape
    pad = block_size // 2
    gamma = (keep_prob / block_size ** 3) * (D * H * W) / (
        (D - block_size + 1) * (H - block_size + 1) * (W - block_size + 1))
    mask = (u < gamma).astype(jnp.float32)
    neg_pool = lax.reduce_window(
        -mask, -jnp.inf, lax.max,
        window_dimensions=(1, 1, block_size, block_size, block_size),
        window_strides=(1, 1, 1, 1, 1),
        padding=((0, 0), (0, 0), (pad, pad), (pad, pad), (pad, pad)))
    block_mask = 1.0 - (-neg_pool)
    out = x * block_mask[:, :, None, :, :]
    out = out * block_mask.size / jnp.sum(block_mask)
    return out


if __name__ == "__main__":
    keep_prob = 0.9
    block_size = 3
    N, C, D, H, W = 2, 2, 8, 8, 16   # H*W = 128 lanes, D*H*W = 1024 lane-dense

    key = jax.random.PRNGKey(0)
    kx, ku = jax.random.split(key)
    x = jax.random.normal(kx, (N, C, D, H, W), dtype=jnp.float32)
    u = jax.random.uniform(ku, (N, C, D, H, W), dtype=jnp.float32)

    out = dropblock3d_pallas(x, u, keep_prob=keep_prob, block_size=block_size)
    out = jax.block_until_ready(out)

    ref = jax.block_until_ready(
        dropblock3d_reference(x, u, keep_prob=keep_prob, block_size=block_size))

    assert out.shape == ref.shape, (out.shape, ref.shape)
    np.testing.assert_allclose(np.asarray(out), np.asarray(ref),
                               rtol=1e-5, atol=1e-5)
    print("KERNEL_OK")
</pallas_src>

<mosaic_0001>
module attributes {stable_mosaic.version = 11 : i64} {
  func.func @block_mask_kernel(%arg0: i32, %arg1: memref<1x16x128xf32, #tpu.memory_space<vmem>>, %arg2: memref<128x128xbf16, #tpu.memory_space<vmem>>, %arg3: memref<16x16xbf16, #tpu.memory_space<vmem>>, %arg4: memref<16x128xf32, #tpu.memory_space<vmem>>, %arg5: memref<1x16x128xbf16, #tpu.memory_space<vmem>>, %arg6: memref<1x1x1xf32, #tpu.memory_space<vmem>>) attributes {dimension_semantics = [#tpu.dimension_semantics<parallel>], iteration_bounds = array<i64: 2>, scalar_prefetch = 0 : i64, scratch_operands = 0 : i64, tpu.core_type = #tpu.core_type<tc>, window_params = [{transform_indices = @transform_0, window_bounds = array<i64: 1, 16, 128>}, {pipeline_mode = #tpu.pipeline_mode<synchronous>, transform_indices = @transform_1, window_bounds = array<i64: 128, 128>}, {pipeline_mode = #tpu.pipeline_mode<synchronous>, transform_indices = @transform_2, window_bounds = array<i64: 16, 16>}, {pipeline_mode = #tpu.pipeline_mode<synchronous>, transform_indices = @transform_3, window_bounds = array<i64: 16, 128>}, {transform_indices = @transform_4, window_bounds = array<i64: 1, 16, 128>}, {transform_indices = @transform_5, window_bounds = array<i64: 1, 1, 1>}]} {
    %c0 = arith.constant 0 : index
    %c0_0 = arith.constant 0 : index
    %c0_1 = arith.constant 0 : index
    %0 = vector.load %arg1[%c0, %c0_0, %c0_1] : memref<1x16x128xf32, #tpu.memory_space<vmem>>, vector<1x16x128xf32>
    %1 = vector.shape_cast %0 : vector<1x16x128xf32> to vector<16x128xf32>
    %cst = arith.constant 0.0677248687 : f32
    %2 = vector.broadcast %cst : f32 to vector<16x128xf32>
    %3 = arith.cmpf olt, %1, %2 : vector<16x128xf32>
    %4 = arith.extui %3 : vector<16x128xi1> to vector<16x128xi32>
    %5 = arith.sitofp %4 : vector<16x128xi32> to vector<16x128xf32>
    %6 = arith.truncf %5 : vector<16x128xf32> to vector<16x128xbf16>
    %c0_2 = arith.constant 0 : index
    %c0_3 = arith.constant 0 : index
    %7 = vector.load %arg2[%c0_2, %c0_3] : memref<128x128xbf16, #tpu.memory_space<vmem>>, vector<128x128xbf16>
    %cst_4 = arith.constant dense<0.000000e+00> : vector<16x128xf32>
    %8 = tpu.matmul %6, %7, %cst_4 {dimension_numbers = #tpu.dot_dimension_numbers<[1], [0], [0], [1], [0, 0, 1, 1], [], []>} : vector<16x128xbf16>, vector<128x128xbf16>, vector<16x128xf32> -> vector<16x128xf32>
    %c0_5 = arith.constant 0 : index
    %c0_6 = arith.constant 0 : index
    %9 = vector.load %arg3[%c0_5, %c0_6] : memref<16x16xbf16, #tpu.memory_space<vmem>>, vector<16x16xbf16>
    %10 = arith.truncf %8 : vector<16x128xf32> to vector<16x128xbf16>
    %cst_7 = arith.constant dense<0.000000e+00> : vector<16x128xf32>
    %11 = tpu.matmul %9, %10, %cst_7 {dimension_numbers = #tpu.dot_dimension_numbers<[1], [0], [0], [1], [0, 0, 1, 1], [], []>} : vector<16x16xbf16>, vector<16x128xbf16>, vector<16x128xf32> -> vector<16x128xf32>
    %c0_8 = arith.constant 0 : index
    %c0_9 = arith.constant 0 : index
    %12 = vector.load %arg4[%c0_8, %c0_9] : memref<16x128xf32, #tpu.memory_space<vmem>>, vector<16x128xf32>
    %cst_10 = arith.constant 5.000000e-01 : f32
    %13 = vector.broadcast %cst_10 : f32 to vector<16x128xf32>
    %14 = arith.subf %12, %13 : vector<16x128xf32>
    %15 = arith.cmpf ogt, %11, %14 : vector<16x128xf32>
    %cst_11 = arith.constant 0.000000e+00 : f32
    %cst_12 = arith.constant 1.000000e+00 : f32
    %16 = vector.broadcast %cst_11 : f32 to vector<16x128xf32>
    %17 = vector.broadcast %cst_12 : f32 to vector<16x128xf32>
    %18 = arith.select %15, %16, %17 : vector<16x128xi1>, vector<16x128xf32>
    %19 = arith.truncf %18 : vector<16x128xf32> to vector<16x128xbf16>
    %c0_13 = arith.constant 0 : index
    %c0_14 = arith.constant 0 : index
    %c0_15 = arith.constant 0 : index
    %20 = vector.load %arg5[%c0_13, %c0_14, %c0_15] : memref<1x16x128xbf16, #tpu.memory_space<vmem>>, vector<1x16x128xbf16>
    %21 = vector.shape_cast %20 : vector<1x16x128xbf16> to vector<16x128xbf16>
    %22 = vector.shape_cast %19 : vector<16x128xbf16> to vector<1x16x128xbf16>
    tpu.vector_store %arg5[%c0_13, %c0_14, %c0_15], %22 {strides = array<i32>} : memref<1x16x128xbf16, #tpu.memory_space<vmem>>, vector<1x16x128xbf16>,
    %23 = vector.shape_cast %18 : vector<16x128xf32> to vector<1x16x128xf32>
    %cst_16 = arith.constant dense<0.000000e+00> : vector<1xf32>
    %24 = vector.multi_reduction <add>, %23, %cst_16 [1, 2] : vector<1x16x128xf32> to vector<1xf32>
    %25 = vector.shape_cast %24 : vector<1xf32> to vector<1x1x1xf32>
    %26 = vector.extract %25[0, 0, 0] : f32 from vector<1x1x1xf32>
    %27 = vector.broadcast %26 : f32 to vector<1x1xf32>
    %c0_17 = arith.constant 0 : index
    %c0_18 = arith.constant 0 : index
    %c0_19 = arith.constant 0 : index
    %28 = vector.load %arg6[%c0_17, %c0_18, %c0_19] : memref<1x1x1xf32, #tpu.memory_space<vmem>>, vector<1x1x1xf32>
    %29 = vector.shape_cast %28 : vector<1x1x1xf32> to vector<1x1xf32>
    %30 = vector.shape_cast %27 : vector<1x1xf32> to vector<1x1x1xf32>
    tpu.vector_store %arg6[%c0_17, %c0_18, %c0_19], %30 {strides = array<i32>} : memref<1x1x1xf32, #tpu.memory_space<vmem>>, vector<1x1x1xf32>,
    return
  }
  func.func @transform_0(%arg0: i32) -> (i32, i32, i32) {
    %c0_i32 = arith.constant 0 : i32
    %c0_i32_0 = arith.constant 0 : i32
    %c0_i32_1 = arith.constant 0 : i32
    return %arg0, %c0_i32, %c0_i32_0 : i32, i32, i32
  }
  func.func @transform_1(%arg0: i32) -> (i32, i32) {
    %c0_i32 = arith.constant 0 : i32
    %c0_i32_0 = arith.constant 0 : i32
    %c0_i32_1 = arith.constant 0 : i32
    return %c0_i32, %c0_i32_0 : i32, i32
  }
  func.func @transform_2(%arg0: i32) -> (i32, i32) {
    %c0_i32 = arith.constant 0 : i32
    %c0_i32_0 = arith.constant 0 : i32
    %c0_i32_1 = arith.constant 0 : i32
    return %c0_i32, %c0_i32_0 : i32, i32
  }
  func.func @transform_3(%arg0: i32) -> (i32, i32) {
    %c0_i32 = arith.constant 0 : i32
    %c0_i32_0 = arith.constant 0 : i32
    %c0_i32_1 = arith.constant 0 : i32
    return %c0_i32, %c0_i32_0 : i32, i32
  }
  func.func @transform_4(%arg0: i32) -> (i32, i32, i32) {
    %c0_i32 = arith.constant 0 : i32
    %c0_i32_0 = arith.constant 0 : i32
    %c0_i32_1 = arith.constant 0 : i32
    return %arg0, %c0_i32, %c0_i32_0 : i32, i32, i32
  }
  func.func @transform_5(%arg0: i32) -> (i32, i32, i32) {
    %c0_i32 = arith.constant 0 : i32
    %c0_i32_0 = arith.constant 0 : i32
    %c0_i32_1 = arith.constant 0 : i32
    return %arg0, %c0_i32, %c0_i32_0 : i32, i32, i32
  }
}

</mosaic_0001>

<bundles_post_ra>
// kernel: tpu_custom_call.1
= control target key start
LH: loop header
LB: loop body
LE: loop exit
PB: predicated region body
PF: predicated region fallthrough
CT: control target
= control target key end

     0   :  { %11 = vsyncpa [#allocation3], 0  ;;  %s1257_s0 = inlined_call_operand.hbm [shape: f32[2,16,128], index: 0, kind: input, shape index: {}]   ;;  %s1258_s1 = inlined_call_operand.hbm [shape: bf16[128,128], index: 1, kind: input, shape index: {}]   ;;  %s1259_s2 = inlined_call_operand.hbm [shape: bf16[16,16], index: 2, kind: input, shape index: {}]   ;;  %s1260_s3 = inlined_call_operand.hbm [shape: f32[16,128], index: 3, kind: input, shape index: {}]   ;;  %s1261_s4 = inlined_call_operand.hbm [shape: bf16[2,16,128], index: 4, kind: output, shape index: {0}]   ;;  %s1262_s5 = inlined_call_operand.vmem [shape: f32[2,1,1], index: 5, kind: output, shape index: {1}]  }
   0x1   :  { %13 = vsyncpa [#allocation3 + $0x1], 0 }
   0x2   :  { %14 = vsyncpa [#allocation6], 0 }
   0x3   :  { %15 = vsyncpa [#allocation9], 0 }
   0x4   :  { %16 = vsyncpa [#allocation4], 0 }
   0x5   :  { %18 = vsyncpa [#allocation4 + $0x1], 0  ;;  %s1041_s18 = smov 0   ;;  %s1043_s19 = smov 0  }
   0x6   :  { %s1045_s20 = smov 0   ;;  %s1047_s21 = smov 0  }
   0x7 LB: > { %s1062_s22 = sadd.s32 4294967295, %s994_s21   ;;  %s636_s23 = sadd.s32 4294967294, %s994_s21   ;;  %s994_s21 = sphi %s1047_s21, %s1288_s21   ;;  %s990_s20 = sphi %s1045_s20, %s1287_s20   ;;  %s986_s19 = sphi %s1043_s19, %s1286_s19   ;;  %s982_s18 = sphi %s1041_s18, %s1285_s18  }
   0x8   : > { %p44_p0 = scmp.ne.s32.totalorder %s986_s19, %s982_s18  ;;  %p1263_p1 = scmp.eq.s32.totalorder %s1062_s22, 0 }
   0x9   : > { %p137_p3 = scmp.eq.s32.totalorder %s636_s23, 1  ;;  %p637_p5 = scmp.ge.s32.totalorder %s994_s21, 1 }
   0xa   : > { %p1071_p4 = por %p1263_p1, %p44_p0  ;;  %p170_p7 = scmp.lt.s32.totalorder %s994_s21, 3 }
   0xb   : > { %p1076_p6 = por %p137_p3, %p44_p0  ;;  %s996_s27 = smov [#allocation5]  }
   0xc   : > { %s1268_s24 = scalar_select %p1071_p4, 1, 0 }
   0xd   : > { %s1269_s25 = scalar_select %p1076_p6, 1, 0 }
   0xe   : > { %p1081_p8 = pnand %p637_p5, %p170_p7  ;;  %s182_s28 = sshll.u32 %s996_s27, 4  ;;  %s183_s28 = int_to_ptr.vmem [resolvable:$true] %s182_s28 }
   0xf   : > { %s997_s30 = smov [#allocation7]   ;;  %s998_s7 = smov [#allocation8]  }
  0x10   : > { %s1270_s26 = scalar_select %p1081_p8, 1, 0 }
  0x11   : > { %p736_p9 = pneg %p1081_p8  ;;  %s195_s6 = sshll.u32 %s997_s30, 4  ;;  %s196_s6 = int_to_ptr.vmem [resolvable:$true] %s195_s6 }
  0x12   : > { %s208_s8 = sshll.u32 %s998_s7, 4  ;;  %s827_s9 = scalar_lea.vmem %s183_s28, 1024  ;;  %s209_s8 = int_to_ptr.vmem [resolvable:$true] %s208_s8 }
  0x13   : > { %p1090_p11 = pnand %p736_p9, %p1263_p1  ;;  %p828_p13 = scmp.ne.s32.totalorder %s183_s28, %s827_s9 }
  0x14   : > { %p835_p5 = scmp.lt.s32.totalorder %s183_s28, %s183_s28  ;;  %p836_p7 = scmp.lt.s32.totalorder %s827_s9, %s827_s9 }
  0x15   : > { %p818_p12 = pneg %p1090_p11 }
  0x16   : > { %p837_p9 = por %p836_p7, %p835_p5 }
  0x17   : > { %p830_p0 = pnand %p828_p13, %p818_p12 }
  0x19   : > { %p831_p3 = pneg %p830_p0 }
  0x1b   : > { %p838_p10 = pnand %p837_p9, %p831_p3 }
  0x1d   : > { %841 = shalt.err (!%p838_p10)
}
  0x1e   : > { %s999_s10 = smov 64   ;;  %s1000_s11 = smov 4  }
  0x1f   : > { %739 = dma.hbm_to_vmem [thread:$0]  (!%p1090_p11), %s1258_s1, 1024, %s183_s28, [#allocation6], %s999_s10, %s999_s10, %s1000_s11  }
  0x20   : > { %s853_s14 = scalar_lea.vmem %s196_s6, 128  ;;  %p861_p2 = scmp.lt.s32.totalorder %s196_s6, %s196_s6 }
  0x21   : > { %p854_p1 = scmp.ne.s32.totalorder %s196_s6, %s853_s14  ;;  %p862_p6 = scmp.lt.s32.totalorder %s853_s14, %s853_s14 }
  0x23   : > { %p856_p13 = pnand %p854_p1, %p818_p12  ;;  %p863_p5 = por %p862_p6, %p861_p2 }
  0x25   : > { %p857_p0 = pneg %p856_p13 }
  0x27   : > { %p864_p3 = pnand %p863_p5, %p857_p0 }
  0x29   : > { %867 = shalt.err (!%p864_p3)
}
  0x2a   : > { %742 = dma.hbm_to_vmem [thread:$0]  (!%p1090_p11), %s1259_s2, 128, %s196_s6, [#allocation6], %s999_s10, %s999_s10, %s1000_s11  }
  0x2b   : > { %s879_s17 = scalar_lea.vmem %s209_s8, 256  ;;  %p887_p9 = scmp.lt.s32.totalorder %s209_s8, %s209_s8 }
  0x2c   : > { %p880_p10 = scmp.ne.s32.totalorder %s209_s8, %s879_s17  ;;  %p888_p13 = scmp.lt.s32.totalorder %s879_s17, %s879_s17 }
  0x2e   : > { %p882_p7 = pnand %p880_p10, %p818_p12  ;;  %p889_p4 = por %p888_p13, %p887_p9 }
  0x30   : > { %p883_p1 = pneg %p882_p7 }
  0x32   : > { %p890_p2 = pnand %p889_p4, %p883_p1 }
  0x34   : > { %893 = shalt.err (!%p890_p2)
}
  0x35   : > { %s1265_s23 = smov 128   ;;  %s1002_s27 = smov 8  }
  0x36   : > { %745 = dma.hbm_to_vmem [thread:$0]  (!%p1090_p11), %s1260_s3, 256, %s209_s8, [#allocation9], %s1265_s23, %s1265_s23, %s1002_s27  }
  0x37   : > { %s1124_s6 = sadd.s32 1, %s994_s21   ;;  %s31_s9 = sadd.s32 1, %s990_s20 }
  0x38   : > { %s28_s7 = ssub.s32 %s994_s21, %s1124_s6  ;;  %p38_p6 = scmp.ne.s32.totalorder %s990_s20, %s986_s19 }
  0x39   : > { %p29_p4 = scmp.eq.s32.totalorder %s28_s7, 0  ;;  %p39_p12 = scmp.eq.s32.totalorder %s994_s21, 0 }
  0x3a   : > { %p757_p0 = scmp.lt.s32.totalorder %s994_s21, 2  ;;  %p1272_p3 = scmp.eq.s32.totalorder %s1062_s22, 1 }
  0x3b   : > { %s1134_s10 = scalar_select %p29_p4, %s990_s20, %s31_s9  }
  0x3c   : > { %p40_p5 = por %p39_p12, %p38_p6  ;;  %p1138_p10 = por %p1272_p3, %p38_p6 }
  0x3d   : > { %s222_s11 = sand.u32 1, %s990_s20   ;;  %s674_s12 = sshll.u32 %s994_s21, 8 }
  0x3e   : > { %s1273_s29 = scalar_select %p1138_p10, 1, 0 }
  0x3f   : > { %s642_s8 = sshll.u32 %s222_s11, 4  ;;  %s1147_s15 = scalar_lea.hbm %s1257_s0, %s674_s12 }
  0x40   : > { %s226_s16 = scalar_lea.vmem [#allocation2], %s642_s8  ;;  %p1149_p11 = pnand %p757_p0, %p40_p5 }
  0x41   : > { %s233_s17 = sshll.u32 %s226_s16, 4  ;;  %s1155_s30 = scalar_lea.sflag [#allocation3], %s222_s11  ;;  %s1153_s17 = int_to_ptr.vmem [resolvable:$true] %s233_s17 }
  0x42   : > { %s894_s7 = scalar_lea.hbm %s1147_s15, 256  ;;  %p896_p1 = pneg %p1149_p11 }
  0x43   : > { %p895_p7 = scmp.ne.s32.totalorder %s1147_s15, %s894_s7  ;;  %s899_s8 = scalar_lea.hbm %s1257_s0, 512 }
  0x44   : > { %p900_p2 = scmp.lt.s32.totalorder %s1147_s15, %s1257_s0  ;;  %p901_p4 = scmp.lt.s32.totalorder %s899_s8, %s894_s7 }
  0x45   : > { %p897_p9 = pnand %p896_p1, %p895_p7 }
  0x46   : > { %p902_p6 = por %p901_p4, %p900_p2 }
  0x47   : > { %p898_p13 = pneg %p897_p9 }
  0x49   : > { %p903_p12 = pnand %p902_p6, %p898_p13 }
  0x4b   : > { %906 = shalt.err (!%p903_p12)
}
  0x4c   : > { %s907_s11 = scalar_lea.vmem %s1153_s17, 256  ;;  %s1003_s16 = smov [#allocation2]  }
  0x4d   : > { %p908_p0 = scmp.ne.s32.totalorder %s1153_s17, %s907_s11  ;;  %s912_s23 = sshll.u32 %s1003_s16, 4  ;;  %s913_s23 = int_to_ptr.vmem [resolvable:$false] %s912_s23 }
  0x4e   : > { %s914_s9 = scalar_lea.vmem %s913_s23, 512  ;;  %p915_p7 = scmp.lt.s32.totalorder %s1153_s17, %s913_s23 }
  0x4f   : > { %p910_p5 = pnand %p908_p0, %p896_p1  ;;  %p916_p9 = scmp.lt.s32.totalorder %s914_s9, %s907_s11 }
  0x51   : > { %p911_p3 = pneg %p910_p5  ;;  %p917_p10 = por %p916_p9, %p915_p7 }
  0x53   : > { %p918_p8 = pnand %p917_p10, %p911_p3 }
  0x55   : > { %921 = shalt.err (!%p918_p8)
}
  0x56   : > { %s1275_s7 = smov 128   ;;  %p1276_p1 = scmp.ne.s32.totalorder %s1270_s26, 0 }
  0x57   : > { %749 = dma.hbm_to_vmem [thread:$0]  (!%p1149_p11), %s1147_s15, 256, %s1153_s17, %s1155_s30, %s1275_s7, %s1275_s7, %s1002_s27  }
  0x58   : > { %245 = sbr.rel (%p1276_p1) target bundleno = 739 (0x2e3), region = 36  ;;  %s1182_s12 = sand.u32 (!%p1276_p1), 1, %s986_s19  }
  0x59   : > { %s646_s23 = sshll.u32 (!%p1276_p1), %s1182_s12, 4  ;;  %s248_s8 = scalar_lea.sflag (!%p1276_p1), [#allocation3], %s1182_s12 }
  0x5a   : > { %s1186_s13 = scalar_lea.vmem (!%p1276_p1), [#allocation2], %s646_s23  ;;  %p1277_p8 = scmp.ne.s32.totalorder (!%p1276_p1), %s1268_s24, 0 }
  0x5d   : > { %965 = dma.done.wait (%p1277_p8), %s248_s8, 256  }
  0x5e   : > { %967 = vsyncadd (%p1277_p8), %s248_s8, 4294967040  ;;  %p1278_p10 = scmp.eq.s32.totalorder %s1062_s22, 0 }
  0x60   : > { %969 = dma.done.wait (%p1278_p10), [#allocation6], 1152   ;;  %p1279_p11 = pmov %p1278_p10 }
  0x61   : > { %p1280_p13 = pmov %p1278_p10 }
  0x62   : > { %971 = vsyncadd (%p1279_p11), [#allocation6], 4294966144 }
  0x63   : > { %973 = dma.done.wait (%p1280_p13), [#allocation9], 256   ;;  %p1281_p2 = pmov %p1278_p10 }
  0x64   : > { %v1004_v0 = vmov 0.0   ;;  %vm1005_vm0 = vmmov 0   ;;  %v807_v1 = vld [vmem:[#allocation5 + $0x38] sm:$0xff]   ;;  %v808_v2 = vld [vmem:[#allocation5 + $0x30] sm:$0xff]   ;;  %v809_v3 = vld [vmem:[#allocation5 + $0x28] sm:$0xff]   ;;  %vm419_vm4 = vcmask 130048  }
  0x65   : > { %975 = vsyncadd (%p1281_p2), [#allocation9], 4294967040  ;;  %692 = vmatprep.subr.bf16.mxu0 %v1004_v0  ;;  %708 = vmatprep.mubr.msk.bf16.mxu0 %vm1005_vm0, %v1004_v0  ;;  %v810_v4 = vld [vmem:[#allocation5 + $0x20] sm:$0xff]   ;;  %v811_v5 = vld [vmem:[#allocation5 + $0x18] sm:$0xff]   ;;  %v1006_v11 = vmov 1.0|1.0  }
  0x66   : > { %712 = vmatprep.subr.bf16.mxu1 %v1004_v0  ;;  %714 = vmatprep.mubr.msk.bf16.mxu1 %vm1005_vm0, %v1004_v0  ;;  %v812_v6 = vld [vmem:[#allocation5 + $0x10] sm:$0xff]   ;;  %v813_v7 = vld [vmem:[#allocation5 + $0x8] sm:$0xff]   ;;  %v814_v10 = vld [vmem:[#allocation5] sm:$0xff]   ;;  %s650_s24 = sshll.u32 %s1182_s12, 3  ;;  %v1007_v26 = vmov 1.0   ;;  %s677_s15 = sshll.u32 %s1062_s22, 7 }
  0x67   : > { %693 = vmatpush3.bf16.msra.mxu0 %v807_v1  ;;  %v297_v8 = vld [vmem:[%s1186_s13] sm:$0xff]  ;;  %v298_v9 = vld [vmem:[%s1186_s13 + $0x8] sm:$0xff]  ;;  %s287_s26 = scalar_lea.vmem [#allocation10], %s650_s24  ;;  %s1209_s30 = scalar_lea.hbm %s1261_s4, %s677_s15 }
  0x68   : > { %694 = vmatprep.subr.bf16.mxu0 %v1004_v0  ;;  %vm299_vm1 = vcmp.lt.f32.partialorder %v297_v8, 0.06772487  ;;  %vm300_vm2 = vcmp.lt.f32.partialorder %v298_v9, 0.06772487  ;;  %v815_v17 = vld [vmem:[#allocation7] sm:$0xff]   ;;  %v464_v18 = vld [vmem:[#allocation8] sm:$0xff] }
  0x69   : > { %vm661_vm3 = vmpackc.low %vm300_vm2, %vm299_vm1  ;;  %v465_v19 = vld [vmem:[#allocation8 + $0x8] sm:$0xff]  ;;  %v665_v20 = vadd.f32 -0.5, %v464_v18  ;;  %s512_s27 = sshll.u32 %s287_s26, 4  ;;  %s496_s14 = scalar_lea.sflag [#allocation4], %s1182_s12  ;;  %s1203_s27 = int_to_ptr.vmem [resolvable:$true] %s512_s27 }
  0x6a   : > { %v666_v22 = vadd.f32 -0.5, %v465_v19  ;;  %s922_s11 = scalar_lea.vmem %s1203_s27, 128  ;;  %p1282_p6 = scmp.ne.s32.totalorder %s1273_s29, 0 }
  0x6b   : > { %695 = vmatpush3.bf16.msra.mxu0 %v808_v2  ;;  %p923_p4 = scmp.ne.s32.totalorder %s1203_s27, %s922_s11  ;;  %s1008_s16 = smov [#allocation10]  }
  0x6c   : > { %696 = vmatprep.subr.bf16.mxu0 %v1004_v0  ;;  %s926_s9 = sshll.u32 %s1008_s16, 4  ;;  %s927_s9 = int_to_ptr.vmem [resolvable:$false] %s926_s9 }
  0x6d   : > { %p924_p12 = pnand %p923_p4, %p1282_p6  ;;  %s928_s7 = scalar_lea.vmem %s927_s9, 256 }
  0x6e   : > { %p929_p5 = scmp.lt.s32.totalorder %s1203_s27, %s927_s9  ;;  %p930_p3 = scmp.lt.s32.totalorder %s928_s7, %s922_s11 }
  0x6f   : > { %697 = vmatpush3.bf16.msra.mxu0 %v809_v3  ;;  %p925_p0 = pneg %p924_p12 }
  0x70   : > { %698 = vmatprep.subr.bf16.mxu0 %v1004_v0  ;;  %p931_p7 = por %p930_p3, %p929_p5 }
  0x72   : > { %p932_p9 = pnand %p931_p7, %p925_p0 }
  0x73   : > { %699 = vmatpush3.bf16.msra.mxu0 %v810_v4 }
  0x74   : > { %700 = vmatprep.subr.bf16.mxu0 %v1004_v0 }
  0x77   : > { %701 = vmatpush3.bf16.msra.mxu0 %v811_v5 }
  0x78   : > { %702 = vmatprep.subr.bf16.mxu0 %v1004_v0 }
  0x7b   : > { %703 = vmatpush3.bf16.msra.mxu0 %v812_v6 }
  0x7c   : > { %704 = vmatprep.subr.bf16.mxu0 %v1004_v0 }
  0x7f   : > { %705 = vmatpush3.bf16.msra.mxu0 %v813_v7 }
  0x80   : > { %706 = vmatprep.subr.bf16.mxu0 %v1004_v0 }
  0x83   : > { %707 = vmatpush3.bf16.msra.mxu0 %v814_v10 }
  0x86   : > { %709 = vmatmul.mubr.msk.bf16.vlgmr.msra.gmra.mxu0 %vm661_vm3, %v1006_v11 }
 0x146   : > { %v404_v12 = vpop.f32.mrf.mxu0 }
 0x148   : > { %v710_v13 = vpop.f32.mrf.mxu0 }
 0x14a   : > { %v407_v14 = vpop.f32.mrf.mxu0 }
 0x14b   : > { %v413_v15 = vpack.c.bf16 %v407_v14, %v404_v12 }
 0x14c   : > { %v711_v16 = vpop.f32.mrf.mxu0 }
 0x14d   : > { %713 = vmatpush3.bf16.msra.mxu1 %v413_v15 }
 0x150   : > { %715 = vmatmul.mubr.msk.bf16.vlgmr.msra.gmra.mxu1 %vm419_vm4, %v815_v17 }
 0x210   : > { %v457_v21 = vpop.f32.mrf.mxu1 }
 0x211   : > { %vm468_vm5 = vcmp.gt.f32.partialorder %v457_v21, %v665_v20 }
 0x212   : > { %v716_v23 = vpop.f32.mrf.mxu1  ;;  %v470_v27 = vsel %vm468_vm5, 0.0, %v1007_v26 }
 0x214   : > { %v460_v24 = vpop.f32.mrf.mxu1 }
 0x215   : > { %vm469_vm6 = vcmp.gt.f32.partialorder %v460_v24, %v666_v22 }
 0x216   : > { %v717_v25 = vpop.f32.mrf.mxu1  ;;  %v471_v28 = vsel %vm469_vm6, 0.0, %v1007_v26 }
 0x217   : > { %v679_v29 = vpack.c.bf16 %v471_v28, %v470_v27  ;;  %v482_v30 = vadd.f32 %v471_v28, %v470_v27 }
 0x219   : > { %680 = vst [vmem:[%s287_s26] sm:$0xff] %v679_v29   ;;  %483 = vadd.xlane.f32.xlu0 %v482_v30 }
 0x21a   : > { %935 = shalt.err (!%p932_p9)
}
 0x21b   : > { %s936_s23 = scalar_lea.hbm %s1209_s30, 128  ;;  %s940_s24 = scalar_lea.hbm %s1261_s4, 256 }
 0x21c   : > { %p937_p1 = scmp.ne.s32.totalorder %s1209_s30, %s936_s23  ;;  %p941_p11 = scmp.lt.s32.totalorder %s1209_s30, %s1261_s4 }
 0x21d   : > { %p942_p13 = scmp.lt.s32.totalorder %s940_s24, %s936_s23 }
 0x21e   : > { %p938_p8 = pnand %p937_p1, %p1282_p6 }
 0x21f   : > { %p943_p2 = por %p942_p13, %p941_p11 }
 0x220   : > { %p939_p10 = pneg %p938_p8 }
 0x222   : > { %p944_p4 = pnand %p943_p2, %p939_p10 }
 0x224   : > { %947 = shalt.err (!%p944_p4)
}
 0x225   : > { %s1009_s17 = smov 64   ;;  %s1010_s28 = smov 4   ;;  %vm493_vm7 = vcmask 0  }
 0x226   : > { %734 = dma.vmem_to_hbm [thread:$0]  (%p1282_p6), %s1203_s27, 128, %s1209_s30, %s496_s14, %s1009_s17, %s1009_s17, %s1010_s28  }
 0x227   : > { %p293_p12 = scmp.lt.s32.totalorder %s1062_s22, 1 }
 0x229   : > { %s1290_s22 = smov (!%p293_p12, %s1062_s22), 1 }
 0x22a   : > { %s295_s9 = scalar_lea.vmem %s1262_s5, %s1290_s22 }
 0x2a2   : > { %v484_v31 = vpop.xlane.xlu0 %483 }
 0x2a3   : > { %v485_v32 = vrot.slane %v484_v31, 4 }
 0x2a5   : > { %v486_v33 = vadd.f32 %v485_v32, %v484_v31 }
 0x2a7   : > { %v487_v34 = vrot.slane %v486_v33, 2 }
 0x2a9   : > { %v488_v35 = vadd.f32 %v487_v34, %v486_v33 }
 0x2ab   : > { %v489_v36 = vrot.slane %v488_v35, 1 }
 0x2ad   : > { %v490_v37 = vadd.f32 %v489_v36, %v488_v35 }
 0x2af   : > { %718 = vpush %v490_v37 }
 0x2e0   : > { %s719_s7 = spop %718 }
 0x2e1   : > { %v492_v38 = vstv %s719_s7 }
 0x2e2   : > { %494 = vst.msk [vmem:[%s295_s9] sm:$0x1] %vm493_vm7, %v492_v38 }
 0x2e3 PF: > { %s530_s29 = sand.u32 1, %s982_s18   ;;  %p1283_p6 = scmp.ne.s32.totalorder %s1269_s25, 0 }
 0x2e4   : > { %p1284_p0 = scmp.ge.s32.totalorder %s994_s21, 2  ;;  %s531_s12 = scalar_lea.sflag [#allocation4], %s530_s29 }
 0x2e6   : > { %p751_p5 = pnand %p1284_p0, %p1283_p6 }
 0x2e8   : > { %p752_p3 = pneg %p751_p5 }
 0x2ea   : > { %977 = dma.done.wait (%p752_p3), %s531_s12, 128  }
 0x2eb   : > { %979 = vsyncadd (%p752_p3), %s531_s12, 4294967168  ;;  %p21_p7 = scmp.ge.s32.totalorder %s1124_s6, 4   ;;  %s1285_s18 = smov %s986_s19 }
 0x2ec   : > { %s1286_s19 = smov %s990_s20  ;;  %s1287_s20 = smov %s1134_s10 }
 0x2ed   : > { %s1288_s21 = smov %s1124_s6  ;;  %23 = sbr.rel (!%p21_p7) target bundleno = 7 (0x7), region = 105 }
 0x2f2   :  { %542 = vsyncpa [#allocation3], 1 }
 0x2f3   :  { %544 = vsyncpa [#allocation3 + $0x1], 1 }
 0x2f4   :  { %545 = vsyncpa [#allocation6], 1 }
 0x2f5   :  { %546 = vsyncpa [#allocation9], 1 }
 0x2f6   :  { %547 = vsyncpa [#allocation4], 1 }
 0x2f7   :  { %549 = vsyncpa [#allocation4 + $0x1], 1 }

</bundles_post_ra>
